<compile_context>
chip_gen: v6e
topology: v6e:2x2x1
jax: 0.10.0
libtpu: 0.0.40
codegen_flags: <defaults>
</compile_context>

<pallas_src>
import functools

import jax
import jax.numpy as jnp
from jax.experimental import pallas as pl
from jax.experimental.pallas import tpu as pltpu

IN_DIM = 28 * 28      # 784
H1 = 128
H2 = 64               # logical hidden-2 width (padded to 128 lanes)
OUT_DIM = 10          # logical output width  (padded to 128 lanes)
H2_PAD = 128
OUT_PAD = 128

MAX_BM = 2048         # batch-tile ceiling: ~16 MB VMEM -> safe on v5e/v6e/v7x


def _round_up(n, m):
    return ((n + m - 1) // m) * m


def _mlp_kernel(x_ref, w1_ref, b1_ref, w2_ref, b2_ref, w3_ref, b3_ref, o_ref,
                *, compute_dtype):
    cd = compute_dtype
    # fc1 + sigmoid   (M=bm, K=784, N=128); MXU accumulates in f32.
    h1 = jax.nn.sigmoid(
        jnp.dot(x_ref[...].astype(cd), w1_ref[...].astype(cd),
                preferred_element_type=jnp.float32) + b1_ref[...])
    # fc2 + sigmoid   (K=128, N=128 padded) -- sigmoid runs on the EUP slot.
    h2 = jax.nn.sigmoid(
        jnp.dot(h1.astype(cd), w2_ref[...].astype(cd),
                preferred_element_type=jnp.float32) + b2_ref[...])
    # fc3 (no activation), lane-dense 128-wide store (no masked vst).
    out = (jnp.dot(h2.astype(cd), w3_ref[...].astype(cd),
                   preferred_element_type=jnp.float32) + b3_ref[...])
    o_ref[...] = out.astype(o_ref.dtype)


def prepare_params(params):
    """One-time lane-padding of the small layers (hoisted out of the forward).

    Padded h2 columns evaluate to sigmoid(0)=0.5 but the matching W3 rows are
    zero, so they contribute nothing; padded output columns are sliced off in
    net_forward.
    """
    w1, b1, w2, b2, w3, b3 = params
    w2p = jnp.pad(w2, ((0, 0), (0, H2_PAD - H2)))
    b2p = jnp.pad(b2, ((0, 0), (0, H2_PAD - H2)))
    w3p = jnp.pad(w3, ((0, H2_PAD - H2), (0, OUT_PAD - OUT_DIM)))
    b3p = jnp.pad(b3, ((0, 0), (0, OUT_PAD - OUT_DIM)))
    return (w1, b1, w2p, b2p, w3p, b3p)


@functools.partial(jax.jit, static_argnames=("bm", "use_bf16"))
def net_forward(x, prepared_params, bm=512, use_bf16=False):
    """Forward pass of Net. x: any shape with trailing 28*28 elements.

    prepared_params: output of prepare_params(init_params(...)).
    use_bf16: feed the MXU bf16 operands (f32 accumulation); looser precision.
    """
    w1, b1, w2p, b2p, w3p, b3p = prepared_params
    in_dtype = jnp.bfloat16 if use_bf16 else jnp.float32
    x2d = x.reshape(-1, IN_DIM).astype(in_dtype)          # x.view(-1, 784)
    B = x2d.shape[0]

    # Batch tile: big enough to amortize the ~0.35us per-step overhead, but
    # capped at (a) half the padded batch so the grid has >=2 steps whenever
    # the batch allows it (both v7x TCs busy, pipeline double-buffered) and
    # (b) MAX_BM so VMEM stays well under v7x's 64 MiB physical ceiling.
    min_tile = 16 if use_bf16 else 8      # bf16 min sublane tile is (16, 128)
    b_pad = _round_up(B, min_tile)
    half = _round_up(max(b_pad // 2, min_tile), min_tile)
    bm_eff = min(bm, half, MAX_BM)
    Bp = _round_up(B, bm_eff)
    if Bp != B:
        x2d = jnp.pad(x2d, ((0, Bp - B), (0, 0)))

    # VMEM footprint: x double-buffer + out double-buffer + resident weights.
    x_item = 2 if use_bf16 else 4
    vmem_bytes = (2 * bm_eff * IN_DIM * x_item
                  + 2 * bm_eff * OUT_PAD * 4
                  + (IN_DIM * H1 + H1 * H2_PAD + H2_PAD * OUT_PAD) * 4
                  + (H1 + H2_PAD + OUT_PAD) * 4)
    vmem_limit = None
    if vmem_bytes > (12 << 20):   # past v5e's 16 MiB default scoped limit
        vmem_limit = min(int(vmem_bytes) + (8 << 20), 48 << 20)

    grid = (Bp // bm_eff,)
    full = lambda i: (0, 0)   # weights/biases: same VMEM-resident block each step

    out = pl.pallas_call(
        functools.partial(
            _mlp_kernel,
            compute_dtype=jnp.bfloat16 if use_bf16 else jnp.float32),
        out_shape=jax.ShapeDtypeStruct((Bp, OUT_PAD), jnp.float32),
        grid=grid,
        in_specs=[
            pl.BlockSpec((bm_eff, IN_DIM), lambda i: (i, 0)),   # x tile (784 not padded in HBM)
            pl.BlockSpec((IN_DIM, H1), full),                   # W1
            pl.BlockSpec((1, H1), full),                        # b1
            pl.BlockSpec((H1, H2_PAD), full),                   # W2 (padded)
            pl.BlockSpec((1, H2_PAD), full),                    # b2 (padded)
            pl.BlockSpec((H2_PAD, OUT_PAD), full),              # W3 (padded)
            pl.BlockSpec((1, OUT_PAD), full),                   # b3 (padded)
        ],
        out_specs=pl.BlockSpec((bm_eff, OUT_PAD), lambda i: (i, 0)),
        compiler_params=pltpu.CompilerParams(
            dimension_semantics=("parallel",),                  # megacore-shardable
            vmem_limit_bytes=vmem_limit),
    )(x2d, w1, b1, w2p, b2p, w3p, b3p)

    # NOTE: consumers that can accept 128-wide padded logits should use
    # out[:B] instead to skip this column-slice HBM round trip.
    return out[:B, :OUT_DIM]


def init_params(key):
    """Deterministic init mimicking torch.nn.Linear's U(-1/sqrt(fan_in), ...)."""
    def linear(key, fan_in, fan_out):
        kw, kb = jax.random.split(key)
        bound = 1.0 / jnp.sqrt(fan_in)
        # stored as (in, out) so the kernel computes x @ W + b
        w = jax.random.uniform(kw, (fan_in, fan_out), jnp.float32, -bound, bound)
        b = jax.random.uniform(kb, (1, fan_out), jnp.float32, -bound, bound)
        return w, b

    k1, k2, k3 = jax.random.split(key, 3)
    w1, b1 = linear(k1, IN_DIM, H1)
    w2, b2 = linear(k2, H1, H2)
    w3, b3 = linear(k3, H2, OUT_DIM)
    return (w1, b1, w2, b2, w3, b3)


def reference_forward(x, params):
    """Plain-JAX reference for correctness checking."""
    w1, b1, w2, b2, w3, b3 = params
    x2d = x.reshape(-1, IN_DIM).astype(jnp.float32)
    h1 = jax.nn.sigmoid(x2d @ w1 + b1)
    h2 = jax.nn.sigmoid(h1 @ w2 + b2)
    return h2 @ w3 + b3


if __name__ == "__main__":
    key = jax.random.PRNGKey(0)
    kx, kx2, kp = jax.random.split(key, 3)
    params = init_params(kp)
    prepared = prepare_params(params)   # one-time weight padding (hoisted)

    # Small, ragged batch: exercises pad-to-tile / slice-back and a 2-step grid.
    batch = 18
    x = jax.random.normal(kx, (batch, 1, 28, 28), dtype=jnp.float32)
    out = jax.block_until_ready(net_forward(x, prepared))
    ref = reference_forward(x, params)
    assert out.shape == (batch, OUT_DIM)
    assert jnp.allclose(out, ref, atol=1e-4, rtol=1e-4), "mismatch vs reference (small)"

    # Larger batch: multi-step (megacore-parallel) grid path, f32 precision.
    batch2 = 512
    x2 = jax.random.normal(kx2, (batch2, 1, 28, 28), dtype=jnp.float32)
    out2 = jax.block_until_ready(net_forward(x2, prepared, bm=512))
    ref2 = reference_forward(x2, params)
    assert out2.shape == (batch2, OUT_DIM)
    assert jnp.allclose(out2, ref2, atol=1e-4, rtol=1e-4), "mismatch vs reference (large)"

    # Optional bf16-fed MXU path (f32 accumulation): intentionally loose check,
    # since bf16 operands cannot meet the 1e-4 f32 tolerance by design.
    out3 = jax.block_until_ready(net_forward(x2, prepared, bm=512, use_bf16=True))
    assert out3.shape == (batch2, OUT_DIM)
    assert bool(jnp.max(jnp.abs(out3 - ref2)) < 0.25), "bf16 path diverged too far"

    print("KERNEL_OK")
</pallas_src>

<mosaic_0001>
module attributes {stable_mosaic.version = 11 : i64} {
  func.func @_mlp_kernel(%arg0: i32, %arg1: memref<16x784xf32, #tpu.memory_space<vmem>>, %arg2: memref<784x128xf32, #tpu.memory_space<vmem>>, %arg3: memref<1x128xf32, #tpu.memory_space<vmem>>, %arg4: memref<128x128xf32, #tpu.memory_space<vmem>>, %arg5: memref<1x128xf32, #tpu.memory_space<vmem>>, %arg6: memref<128x128xf32, #tpu.memory_space<vmem>>, %arg7: memref<1x128xf32, #tpu.memory_space<vmem>>, %arg8: memref<16x128xf32, #tpu.memory_space<vmem>>) attributes {dimension_semantics = [#tpu.dimension_semantics<parallel>], iteration_bounds = array<i64: 2>, scalar_prefetch = 0 : i64, scratch_operands = 0 : i64, tpu.core_type = #tpu.core_type<tc>, window_params = [{transform_indices = @transform_0, window_bounds = array<i64: 16, 784>}, {pipeline_mode = #tpu.pipeline_mode<synchronous>, transform_indices = @transform_1, window_bounds = array<i64: 784, 128>}, {pipeline_mode = #tpu.pipeline_mode<synchronous>, transform_indices = @transform_2, window_bounds = array<i64: 1, 128>}, {pipeline_mode = #tpu.pipeline_mode<synchronous>, transform_indices = @transform_3, window_bounds = array<i64: 128, 128>}, {pipeline_mode = #tpu.pipeline_mode<synchronous>, transform_indices = @transform_4, window_bounds = array<i64: 1, 128>}, {pipeline_mode = #tpu.pipeline_mode<synchronous>, transform_indices = @transform_5, window_bounds = array<i64: 128, 128>}, {pipeline_mode = #tpu.pipeline_mode<synchronous>, transform_indices = @transform_6, window_bounds = array<i64: 1, 128>}, {transform_indices = @transform_7, window_bounds = array<i64: 16, 128>}]} {
    %c0 = arith.constant 0 : index
    %c0_0 = arith.constant 0 : index
    %0 = vector.load %arg1[%c0, %c0_0] : memref<16x784xf32, #tpu.memory_space<vmem>>, vector<16x784xf32>
    %c0_1 = arith.constant 0 : index
    %c0_2 = arith.constant 0 : index
    %1 = vector.load %arg2[%c0_1, %c0_2] : memref<784x128xf32, #tpu.memory_space<vmem>>, vector<784x128xf32>
    %cst = arith.constant dense<0.000000e+00> : vector<16x128xf32>
    %2 = tpu.matmul %0, %1, %cst {dimension_numbers = #tpu.dot_dimension_numbers<[1], [0], [0], [1], [0, 0, 1, 1], [], []>} : vector<16x784xf32>, vector<784x128xf32>, vector<16x128xf32> -> vector<16x128xf32>
    %c0_3 = arith.constant 0 : index
    %c0_4 = arith.constant 0 : index
    %3 = vector.load %arg3[%c0_3, %c0_4] : memref<1x128xf32, #tpu.memory_space<vmem>>, vector<1x128xf32>
    %4 = vector.broadcast %3 : vector<1x128xf32> to vector<16x128xf32>
    %5 = arith.addf %2, %4 : vector<16x128xf32>
    %6 = arith.negf %5 : vector<16x128xf32>
    %7 = math.exp %6 : vector<16x128xf32>
    %cst_5 = arith.constant 1.000000e+00 : f32
    %8 = vector.broadcast %cst_5 : f32 to vector<16x128xf32>
    %9 = arith.addf %8, %7 : vector<16x128xf32>
    %10 = arith.divf %8, %9 : vector<16x128xf32>
    %c0_6 = arith.constant 0 : index
    %c0_7 = arith.constant 0 : index
    %11 = vector.load %arg4[%c0_6, %c0_7] : memref<128x128xf32, #tpu.memory_space<vmem>>, vector<128x128xf32>
    %cst_8 = arith.constant dense<0.000000e+00> : vector<16x128xf32>
    %12 = tpu.matmul %10, %11, %cst_8 {dimension_numbers = #tpu.dot_dimension_numbers<[1], [0], [0], [1], [0, 0, 1, 1], [], []>} : vector<16x128xf32>, vector<128x128xf32>, vector<16x128xf32> -> vector<16x128xf32>
    %c0_9 = arith.constant 0 : index
    %c0_10 = arith.constant 0 : index
    %13 = vector.load %arg5[%c0_9, %c0_10] : memref<1x128xf32, #tpu.memory_space<vmem>>, vector<1x128xf32>
    %14 = vector.broadcast %13 : vector<1x128xf32> to vector<16x128xf32>
    %15 = arith.addf %12, %14 : vector<16x128xf32>
    %16 = arith.negf %15 : vector<16x128xf32>
    %17 = math.exp %16 : vector<16x128xf32>
    %cst_11 = arith.constant 1.000000e+00 : f32
    %18 = vector.broadcast %cst_11 : f32 to vector<16x128xf32>
    %19 = arith.addf %18, %17 : vector<16x128xf32>
    %20 = arith.divf %18, %19 : vector<16x128xf32>
    %c0_12 = arith.constant 0 : index
    %c0_13 = arith.constant 0 : index
    %21 = vector.load %arg6[%c0_12, %c0_13] : memref<128x128xf32, #tpu.memory_space<vmem>>, vector<128x128xf32>
    %cst_14 = arith.constant dense<0.000000e+00> : vector<16x128xf32>
    %22 = tpu.matmul %20, %21, %cst_14 {dimension_numbers = #tpu.dot_dimension_numbers<[1], [0], [0], [1], [0, 0, 1, 1], [], []>} : vector<16x128xf32>, vector<128x128xf32>, vector<16x128xf32> -> vector<16x128xf32>
    %c0_15 = arith.constant 0 : index
    %c0_16 = arith.constant 0 : index
    %23 = vector.load %arg7[%c0_15, %c0_16] : memref<1x128xf32, #tpu.memory_space<vmem>>, vector<1x128xf32>
    %24 = vector.broadcast %23 : vector<1x128xf32> to vector<16x128xf32>
    %25 = arith.addf %22, %24 : vector<16x128xf32>
    %c0_17 = arith.constant 0 : index
    %c0_18 = arith.constant 0 : index
    %26 = vector.load %arg8[%c0_17, %c0_18] : memref<16x128xf32, #tpu.memory_space<vmem>>, vector<16x128xf32>
    tpu.vector_store %arg8[%c0_17, %c0_18], %25 {strides = array<i32>} : memref<16x128xf32, #tpu.memory_space<vmem>>, vector<16x128xf32>,
    return
  }
  func.func @transform_0(%arg0: i32) -> (i32, i32) {
    %c0_i32 = arith.constant 0 : i32
    %c0_i32_0 = arith.constant 0 : i32
    return %arg0, %c0_i32 : i32, i32
  }
  func.func @transform_1(%arg0: i32) -> (i32, i32) {
    %c0_i32 = arith.constant 0 : i32
    %c0_i32_0 = arith.constant 0 : i32
    %c0_i32_1 = arith.constant 0 : i32
    return %c0_i32, %c0_i32_0 : i32, i32
  }
  func.func @transform_2(%arg0: i32) -> (i32, i32) {
    %c0_i32 = arith.constant 0 : i32
    %c0_i32_0 = arith.constant 0 : i32
    %c0_i32_1 = arith.constant 0 : i32
    return %c0_i32, %c0_i32_0 : i32, i32
  }
  func.func @transform_3(%arg0: i32) -> (i32, i32) {
    %c0_i32 = arith.constant 0 : i32
    %c0_i32_0 = arith.constant 0 : i32
    %c0_i32_1 = arith.constant 0 : i32
    return %c0_i32, %c0_i32_0 : i32, i32
  }
  func.func @transform_4(%arg0: i32) -> (i32, i32) {
    %c0_i32 = arith.constant 0 : i32
    %c0_i32_0 = arith.constant 0 : i32
    %c0_i32_1 = arith.constant 0 : i32
    return %c0_i32, %c0_i32_0 : i32, i32
  }
  func.func @transform_5(%arg0: i32) -> (i32, i32) {
    %c0_i32 = arith.constant 0 : i32
    %c0_i32_0 = arith.constant 0 : i32
    %c0_i32_1 = arith.constant 0 : i32
    return %c0_i32, %c0_i32_0 : i32, i32
  }
  func.func @transform_6(%arg0: i32) -> (i32, i32) {
    %c0_i32 = arith.constant 0 : i32
    %c0_i32_0 = arith.constant 0 : i32
    %c0_i32_1 = arith.constant 0 : i32
    return %c0_i32, %c0_i32_0 : i32, i32
  }
  func.func @transform_7(%arg0: i32) -> (i32, i32) {
    %c0_i32 = arith.constant 0 : i32
    %c0_i32_0 = arith.constant 0 : i32
    return %arg0, %c0_i32 : i32, i32
  }
}

</mosaic_0001>

<bundles_post_ra>
// kernel: net_forward.1
= control target key start
LH: loop header
LB: loop body
LE: loop exit
PB: predicated region body
PF: predicated region fallthrough
CT: control target
= control target key end

     0   :  { %s1313_s24 = smov 0   ;;  %s1757_s0 = inlined_call_operand.vmem [shape: f32[32,784], index: 0, kind: input, shape index: {}]   ;;  %s1758_s1 = inlined_call_operand.vmem [shape: f32[784,128], index: 1, kind: input, shape index: {}]   ;;  %s1759_s2 = inlined_call_operand.vmem [shape: f32[1,128], index: 2, kind: input, shape index: {}]   ;;  %s1760_s3 = inlined_call_operand.vmem [shape: f32[128,128], index: 3, kind: input, shape index: {}]   ;;  %s1761_s4 = inlined_call_operand.vmem [shape: f32[1,128], index: 4, kind: input, shape index: {}]   ;;  %s1762_s5 = inlined_call_operand.vmem [shape: f32[128,128], index: 5, kind: input, shape index: {}]   ;;  %s1763_s6 = inlined_call_operand.vmem [shape: f32[1,128], index: 6, kind: input, shape index: {}]   ;;  %s1764_s7 = inlined_call_operand.vmem [shape: f32[32,128], index: 7, kind: output, shape index: {}]  }
   0x1 LB: > { %s989_s25 = sadd.s32 4294967295, %s1271_s24   ;;  %p993_p0 = scmp.ge.s32.totalorder %s1271_s24, 1  ;;  %s1271_s24 = sphi %s1313_s24, %s17_s24  }
   0x2   : > { %p239_p1 = scmp.lt.s32.totalorder %s1271_s24, 3 }
   0x4   : > { %p240_p2 = pnand %p993_p0, %p239_p1 }
   0x5   : > { %s1398_s11 = sshll.u32 (!%p240_p2), %s989_s25, 1 }
   0x6   : > { %243 = sbr.rel (%p240_p2) target bundleno = 743 (0x2e7), region = 48  ;;  %p273_p3 = scmp.lt.s32.totalorder (!%p240_p2), %s1398_s11, 3 }
   0xb   : > { %v330_v0 = vld [vmem:[%s1758_s1 + $0xf8] sm:$0xff]  ;;  %v329_v2 = vld [vmem:[%s1758_s1 + $0xf0] sm:$0xff]  ;;  %v328_v6 = vld [vmem:[%s1758_s1 + $0xe8] sm:$0xff]  ;;  %s1766_s11 = smov (!%p273_p3, %s1398_s11), 3  ;;  %vm404_vm0 = vcmask 130048  }
   0xc   : > { %v314_v1 = vld [vmem:[%s1758_s1 + $0x78] sm:$0xff]  ;;  %1009 = vmatprep.subr.mxu0 %v330_v0  ;;  %v313_v4 = vld [vmem:[%s1758_s1 + $0x70] sm:$0xff]  ;;  %v312_v8 = vld [vmem:[%s1758_s1 + $0x68] sm:$0xff]  ;;  %s1240_s14 = smul.u32 56, %s1766_s11  ;;  %s997_s23 = sshll.u32 %s1766_s11, 3 }
   0xd   : > { %v362_v3 = vld [vmem:[%s1758_s1 + $0x1f8] sm:$0xff]  ;;  %1010 = vmatpush3.msra.mxu0 %v314_v1  ;;  %v361_v7 = vld [vmem:[%s1758_s1 + $0x1f0] sm:$0xff]  ;;  %v360_v10 = vld [vmem:[%s1758_s1 + $0x1e8] sm:$0xff]  ;;  %s283_s29 = scalar_lea.vmem %s1764_s7, %s997_s23 }
   0xe   : > { %v346_v5 = vld [vmem:[%s1758_s1 + $0x178] sm:$0xff]  ;;  %1047 = vmatprep.subr.mxu1 %v362_v3  ;;  %1011 = vmatprep.subr.mxu0 %v329_v2  ;;  %v345_v9 = vld [vmem:[%s1758_s1 + $0x170] sm:$0xff]  ;;  %v327_v11 = vld [vmem:[%s1758_s1 + $0xe0] sm:$0xff]  ;;  %s1500_s12 = scalar_lea.vmem %s1757_s0, %s1240_s14 }
   0xf   : > { %1048 = vmatpush3.msra.mxu1 %v346_v5  ;;  %1012 = vmatpush3.msra.mxu0 %v313_v4  ;;  %v344_v12 = vld [vmem:[%s1758_s1 + $0x168] sm:$0xff]  ;;  %v311_v13 = vld [vmem:[%s1758_s1 + $0x60] sm:$0xff]  ;;  %v326_v15 = vld [vmem:[%s1758_s1 + $0xd8] sm:$0xff] }
  0x10   : > { %1049 = vmatprep.subr.mxu1 %v361_v7  ;;  %1013 = vmatprep.subr.mxu0 %v328_v6  ;;  %v359_v14 = vld [vmem:[%s1758_s1 + $0x1e0] sm:$0xff]  ;;  %v310_v17 = vld [vmem:[%s1758_s1 + $0x58] sm:$0xff]  ;;  %v325_v19 = vld [vmem:[%s1758_s1 + $0xd0] sm:$0xff] }
  0x11   : > { %1050 = vmatpush3.msra.mxu1 %v345_v9  ;;  %1014 = vmatpush3.msra.mxu0 %v312_v8  ;;  %v343_v16 = vld [vmem:[%s1758_s1 + $0x160] sm:$0xff]  ;;  %v358_v18 = vld [vmem:[%s1758_s1 + $0x1d8] sm:$0xff]  ;;  %v309_v21 = vld [vmem:[%s1758_s1 + $0x50] sm:$0xff] }
  0x12   : > { %1051 = vmatprep.subr.mxu1 %v360_v10  ;;  %1015 = vmatprep.subr.mxu0 %v327_v11  ;;  %v342_v20 = vld [vmem:[%s1758_s1 + $0x158] sm:$0xff]  ;;  %v357_v22 = vld [vmem:[%s1758_s1 + $0x1d0] sm:$0xff]  ;;  %v324_v23 = vld [vmem:[%s1758_s1 + $0xc8] sm:$0xff] }
  0x13   : > { %1052 = vmatpush3.msra.mxu1 %v344_v12  ;;  %1016 = vmatpush3.msra.mxu0 %v311_v13  ;;  %v341_v24 = vld [vmem:[%s1758_s1 + $0x150] sm:$0xff]  ;;  %v308_v25 = vld [vmem:[%s1758_s1 + $0x48] sm:$0xff]  ;;  %v323_v27 = vld [vmem:[%s1758_s1 + $0xc0] sm:$0xff] }
  0x14   : > { %1053 = vmatprep.subr.mxu1 %v359_v14  ;;  %1017 = vmatprep.subr.mxu0 %v326_v15  ;;  %v356_v26 = vld [vmem:[%s1758_s1 + $0x1c8] sm:$0xff]  ;;  %v307_v29 = vld [vmem:[%s1758_s1 + $0x40] sm:$0xff]  ;;  %v322_v31 = vld [vmem:[%s1758_s1 + $0xb8] sm:$0xff] }
  0x15   : > { %1054 = vmatpush3.msra.mxu1 %v343_v16  ;;  %1018 = vmatpush3.msra.mxu0 %v310_v17  ;;  %v340_v28 = vld [vmem:[%s1758_s1 + $0x148] sm:$0xff]  ;;  %v355_v30 = vld [vmem:[%s1758_s1 + $0x1c0] sm:$0xff]  ;;  %v306_v33 = vld [vmem:[%s1758_s1 + $0x38] sm:$0xff] }
  0x16   : > { %1055 = vmatprep.subr.mxu1 %v358_v18  ;;  %1019 = vmatprep.subr.mxu0 %v325_v19  ;;  %v339_v32 = vld [vmem:[%s1758_s1 + $0x140] sm:$0xff]  ;;  %v354_v34 = vld [vmem:[%s1758_s1 + $0x1b8] sm:$0xff]  ;;  %v321_v35 = vld [vmem:[%s1758_s1 + $0xb0] sm:$0xff] }
  0x17   : > { %1056 = vmatpush3.msra.mxu1 %v342_v20  ;;  %1020 = vmatpush3.msra.mxu0 %v309_v21  ;;  %v338_v36 = vld [vmem:[%s1758_s1 + $0x138] sm:$0xff]  ;;  %v305_v37 = vld [vmem:[%s1758_s1 + $0x30] sm:$0xff]  ;;  %v320_v39 = vld [vmem:[%s1758_s1 + $0xa8] sm:$0xff] }
  0x18   : > { %1057 = vmatprep.subr.mxu1 %v357_v22  ;;  %1021 = vmatprep.subr.mxu0 %v324_v23  ;;  %v353_v38 = vld [vmem:[%s1758_s1 + $0x1b0] sm:$0xff]  ;;  %v304_v41 = vld [vmem:[%s1758_s1 + $0x28] sm:$0xff]  ;;  %v319_v43 = vld [vmem:[%s1758_s1 + $0xa0] sm:$0xff] }
  0x19   : > { %1058 = vmatpush3.msra.mxu1 %v341_v24  ;;  %1022 = vmatpush3.msra.mxu0 %v308_v25  ;;  %v337_v40 = vld [vmem:[%s1758_s1 + $0x130] sm:$0xff]  ;;  %v352_v42 = vld [vmem:[%s1758_s1 + $0x1a8] sm:$0xff]  ;;  %v303_v45 = vld [vmem:[%s1758_s1 + $0x20] sm:$0xff] }
  0x1a   : > { %1059 = vmatprep.subr.mxu1 %v356_v26  ;;  %1023 = vmatprep.subr.mxu0 %v323_v27  ;;  %v336_v44 = vld [vmem:[%s1758_s1 + $0x128] sm:$0xff]  ;;  %v351_v46 = vld [vmem:[%s1758_s1 + $0x1a0] sm:$0xff]  ;;  %v318_v47 = vld [vmem:[%s1758_s1 + $0x98] sm:$0xff] }
  0x1b   : > { %1060 = vmatpush3.msra.mxu1 %v340_v28  ;;  %1024 = vmatpush3.msra.mxu0 %v307_v29  ;;  %v335_v48 = vld [vmem:[%s1758_s1 + $0x120] sm:$0xff]  ;;  %v302_v49 = vld [vmem:[%s1758_s1 + $0x18] sm:$0xff]  ;;  %v317_v51 = vld [vmem:[%s1758_s1 + $0x90] sm:$0xff] }
  0x1c   : > { %1061 = vmatprep.subr.mxu1 %v355_v30  ;;  %1025 = vmatprep.subr.mxu0 %v322_v31  ;;  %v350_v50 = vld [vmem:[%s1758_s1 + $0x198] sm:$0xff]  ;;  %v301_v53 = vld [vmem:[%s1758_s1 + $0x10] sm:$0xff]  ;;  %v316_v55 = vld [vmem:[%s1758_s1 + $0x88] sm:$0xff] }
  0x1d   : > { %1062 = vmatpush3.msra.mxu1 %v339_v32  ;;  %1026 = vmatpush3.msra.mxu0 %v306_v33  ;;  %v334_v52 = vld [vmem:[%s1758_s1 + $0x118] sm:$0xff]  ;;  %v349_v54 = vld [vmem:[%s1758_s1 + $0x190] sm:$0xff]  ;;  %v300_v57 = vld [vmem:[%s1758_s1 + $0x8] sm:$0xff] }
  0x1e   : > { %1063 = vmatprep.subr.mxu1 %v354_v34  ;;  %1027 = vmatprep.subr.mxu0 %v321_v35  ;;  %v333_v56 = vld [vmem:[%s1758_s1 + $0x110] sm:$0xff]  ;;  %v348_v58 = vld [vmem:[%s1758_s1 + $0x188] sm:$0xff]  ;;  %v315_v59 = vld [vmem:[%s1758_s1 + $0x80] sm:$0xff] }
  0x1f   : > { %1064 = vmatpush3.msra.mxu1 %v338_v36  ;;  %1028 = vmatpush3.msra.mxu0 %v305_v37  ;;  %v286_v60 = vld [vmem:[%s1500_s12 + $0x8] sm:$0xff]  ;;  %v299_v61 = vld [vmem:[%s1758_s1] sm:$0xff]  ;;  %v394_v1 = vld [vmem:[%s1758_s1 + $0x2f8] sm:$0xff] }
  0x20   : > { %1065 = vmatprep.subr.mxu1 %v353_v38  ;;  %1029 = vmatprep.subr.mxu0 %v320_v39  ;;  %v332_v62 = vld [vmem:[%s1758_s1 + $0x108] sm:$0xff]  ;;  %v285_v63 = vld [vmem:[%s1500_s12] sm:$0xff]  ;;  %v288_v3 = vld [vmem:[%s1500_s12 + $0x18] sm:$0xff] }
  0x21   : > { %1066 = vmatpush3.msra.mxu1 %v337_v40  ;;  %1030 = vmatpush3.msra.mxu0 %v304_v41  ;;  %v347_v0 = vld [vmem:[%s1758_s1 + $0x180] sm:$0xff]  ;;  %v378_v4 = vld [vmem:[%s1758_s1 + $0x278] sm:$0xff]  ;;  %v287_v5 = vld [vmem:[%s1500_s12 + $0x10] sm:$0xff] }
  0x22   : > { %1067 = vmatprep.subr.mxu1 %v352_v42  ;;  %1031 = vmatprep.subr.mxu0 %v319_v43  ;;  %v331_v2 = vld [vmem:[%s1758_s1 + $0x100] sm:$0xff]  ;;  %v393_v6 = vld [vmem:[%s1758_s1 + $0x2f0] sm:$0xff]  ;;  %v392_v9 = vld [vmem:[%s1758_s1 + $0x2e8] sm:$0xff] }
  0x23   : > { %1068 = vmatpush3.msra.mxu1 %v336_v44  ;;  %1032 = vmatpush3.msra.mxu0 %v303_v45  ;;  %v377_v7 = vld [vmem:[%s1758_s1 + $0x270] sm:$0xff]  ;;  %v293_v8 = vld [vmem:[%s1500_s12 + $0x40] sm:$0xff]  ;;  %v292_v10 = vld [vmem:[%s1500_s12 + $0x38] sm:$0xff] }
  0x24   : > { %1069 = vmatprep.subr.mxu1 %v351_v46  ;;  %1033 = vmatprep.subr.mxu0 %v318_v47  ;;  %v376_v11 = vld [vmem:[%s1758_s1 + $0x268] sm:$0xff]  ;;  %v295_v12 = vld [vmem:[%s1500_s12 + $0x50] sm:$0xff]  ;;  %v391_v13 = vld [vmem:[%s1758_s1 + $0x2e0] sm:$0xff] }
  0x25   : > { %1070 = vmatpush3.msra.mxu1 %v335_v48  ;;  %1034 = vmatpush3.msra.mxu0 %v302_v49  ;;  %v294_v14 = vld [vmem:[%s1500_s12 + $0x48] sm:$0xff]  ;;  %v375_v15 = vld [vmem:[%s1758_s1 + $0x260] sm:$0xff]  ;;  %v390_v17 = vld [vmem:[%s1758_s1 + $0x2d8] sm:$0xff] }
  0x26   : > { %1071 = vmatprep.subr.mxu1 %v350_v50  ;;  %1035 = vmatprep.subr.mxu0 %v317_v51  ;;  %v396_v16 = vld [vmem:[%s1758_s1 + $0x308] sm:$0xff]  ;;  %v374_v19 = vld [vmem:[%s1758_s1 + $0x258] sm:$0xff]  ;;  %v389_v20 = vld [vmem:[%s1758_s1 + $0x2d0] sm:$0xff] }
  0x27   : > { %1072 = vmatpush3.msra.mxu1 %v334_v52  ;;  %1036 = vmatpush3.msra.mxu0 %v301_v53  ;;  %v290_v18 = vld [vmem:[%s1500_s12 + $0x28] sm:$0xff]  ;;  %v395_v21 = vld [vmem:[%s1758_s1 + $0x300] sm:$0xff]  ;;  %v373_v22 = vld [vmem:[%s1758_s1 + $0x250] sm:$0xff] }
  0x28   : > { %1073 = vmatprep.subr.mxu1 %v349_v54  ;;  %1037 = vmatprep.subr.mxu0 %v316_v55  ;;  %v388_v23 = vld [vmem:[%s1758_s1 + $0x2c8] sm:$0xff]  ;;  %v291_v24 = vld [vmem:[%s1500_s12 + $0x30] sm:$0xff]  ;;  %v387_v27 = vld [vmem:[%s1758_s1 + $0x2c0] sm:$0xff] }
  0x29   : > { %1074 = vmatpush3.msra.mxu1 %v333_v56  ;;  %1038 = vmatpush3.msra.mxu0 %v300_v57  ;;  %v372_v25 = vld [vmem:[%s1758_s1 + $0x248] sm:$0xff]  ;;  %v371_v28 = vld [vmem:[%s1758_s1 + $0x240] sm:$0xff]  ;;  %v386_v29 = vld [vmem:[%s1758_s1 + $0x2b8] sm:$0xff] }
  0x2a   : > { %1075 = vmatprep.subr.mxu1 %v348_v58  ;;  %1039 = vmatprep.subr.mxu0 %v315_v59  ;;  %v298_v26 = vld [vmem:[%s1500_s12 + $0x68] sm:$0xff]  ;;  %v370_v30 = vld [vmem:[%s1758_s1 + $0x238] sm:$0xff]  ;;  %v385_v31 = vld [vmem:[%s1758_s1 + $0x2b0] sm:$0xff] }
  0x2b   : > { %475 = vmatprep.mubr.f32.mxu0 %v286_v60  ;;  %1040 = vmatpush3.msra.mxu0 %v299_v61  ;;  %v369_v32 = vld [vmem:[%s1758_s1 + $0x230] sm:$0xff]  ;;  %v384_v33 = vld [vmem:[%s1758_s1 + $0x2a8] sm:$0xff]  ;;  %v383_v35 = vld [vmem:[%s1758_s1 + $0x2a0] sm:$0xff] }
  0x2c   : > { %1076 = vmatpush3.msra.mxu1 %v332_v62  ;;  %476 = vmatmul.mubr.f32.vlgmr.msra.gmra.mxu0 %v285_v63  ;;  %v368_v34 = vld [vmem:[%s1758_s1 + $0x228] sm:$0xff]  ;;  %v367_v36 = vld [vmem:[%s1758_s1 + $0x220] sm:$0xff]  ;;  %v382_v37 = vld [vmem:[%s1758_s1 + $0x298] sm:$0xff] }
  0x2d   : > { %1077 = vmatprep.subr.mxu1 %v347_v0  ;;  %1085 = vmatprep.subr.mxu0 %v394_v1  ;;  %v366_v38 = vld [vmem:[%s1758_s1 + $0x218] sm:$0xff]  ;;  %v381_v39 = vld [vmem:[%s1758_s1 + $0x290] sm:$0xff]  ;;  %v380_v41 = vld [vmem:[%s1758_s1 + $0x288] sm:$0xff] }
  0x2e   : > { %1078 = vmatpush3.msra.mxu1 %v331_v2  ;;  %550 = vmatprep.mubr.f32.mxu1 %v288_v3  ;;  %v365_v40 = vld [vmem:[%s1758_s1 + $0x210] sm:$0xff]  ;;  %v364_v42 = vld [vmem:[%s1758_s1 + $0x208] sm:$0xff]  ;;  %v379_v43 = vld [vmem:[%s1758_s1 + $0x280] sm:$0xff] }
  0x2f   : > { %1086 = vmatpush3.msra.mxu0 %v378_v4  ;;  %551 = vmatmul.mubr.f32.vlgmr.msra.gmra.mxu1 %v287_v5  ;;  %v363_v44 = vld [vmem:[%s1758_s1 + $0x200] sm:$0xff]  ;;  %v296_v47 = vld [vmem:[%s1500_s12 + $0x58] sm:$0xff]  ;;  %v737_v49 = vld [vmem:[%s1760_s3 + $0x70] sm:$0xff] }
  0x30   : > { %1087 = vmatprep.subr.mxu0 %v393_v6  ;;  %480 = vmatprep.mubr.f32.mxu0 %v293_v8  ;;  %v289_v45 = vld [vmem:[%s1500_s12 + $0x20] sm:$0xff]  ;;  %v738_v48 = vld [vmem:[%s1760_s3 + $0x78] sm:$0xff]  ;;  %v736_v50 = vld [vmem:[%s1760_s3 + $0x68] sm:$0xff] }
  0x31   : > { %1088 = vmatpush3.msra.mxu0 %v377_v7  ;;  %555 = vmatprep.mubr.f32.mxu1 %v295_v12  ;;  %v297_v46 = vld [vmem:[%s1500_s12 + $0x60] sm:$0xff]  ;;  %v734_v52 = vld [vmem:[%s1760_s3 + $0x58] sm:$0xff]  ;;  %v733_v53 = vld [vmem:[%s1760_s3 + $0x50] sm:$0xff] }
  0x32   : > { %1089 = vmatprep.subr.mxu0 %v392_v9  ;;  %481 = vmatmul.mubr.f32.gmra.mxu0 %v292_v10  ;;  %v735_v51 = vld [vmem:[%s1760_s3 + $0x60] sm:$0xff]  ;;  %v732_v54 = vld [vmem:[%s1760_s3 + $0x48] sm:$0xff]  ;;  %v730_v56 = vld [vmem:[%s1760_s3 + $0x38] sm:$0xff] }
  0x33   : > { %1090 = vmatpush3.msra.mxu0 %v376_v11  ;;  %556 = vmatmul.mubr.f32.gmra.mxu1 %v294_v14  ;;  %v731_v55 = vld [vmem:[%s1760_s3 + $0x40] sm:$0xff]  ;;  %v729_v57 = vld [vmem:[%s1760_s3 + $0x30] sm:$0xff]  ;;  %v728_v58 = vld [vmem:[%s1760_s3 + $0x28] sm:$0xff] }
  0x34   : > { %1091 = vmatprep.subr.mxu0 %v391_v13  ;;  %1163 = vmatprep.subr.mxu1 %v396_v16  ;;  %v727_v59 = vld [vmem:[%s1760_s3 + $0x20] sm:$0xff]  ;;  %v726_v60 = vld [vmem:[%s1760_s3 + $0x18] sm:$0xff]  ;;  %v725_v61 = vld [vmem:[%s1760_s3 + $0x10] sm:$0xff] }
  0x35   : > { %1092 = vmatpush3.msra.mxu0 %v375_v15  ;;  %625 = vmatprep.mubr.f32.mxu0 %v290_v18  ;;  %v724_v62 = vld [vmem:[%s1760_s3 + $0x8] sm:$0xff]  ;;  %v723_v63 = vld [vmem:[%s1760_s3] sm:$0xff] }
  0x36   : > { %1093 = vmatprep.subr.mxu0 %v390_v17  ;;  %1164 = vmatpush3.msra.mxu1 %v396_v16  ;;  %v998_v7 = vld [vmem:[%s1759_s2] ss:$0 sm:$0xff] }
  0x37   : > { %1094 = vmatpush3.msra.mxu0 %v374_v19  ;;  %1165 = vmatprep.subr.mxu1 %v395_v21 }
  0x38   : > { %1095 = vmatprep.subr.mxu0 %v389_v20  ;;  %1166 = vmatpush3.msra.mxu1 %v395_v21 }
  0x39   : > { %1096 = vmatpush3.msra.mxu0 %v373_v22  ;;  %1167 = vmatprep.mubr.msk.f32.mxu1 %vm404_vm0, %v291_v24 }
  0x3a   : > { %1097 = vmatprep.subr.mxu0 %v388_v23  ;;  %1168 = vmatmul.mubr.msk.f32.vlgmr.msra.gmra.mxu1 %vm404_vm0, %v298_v26 }
  0x3b   : > { %1098 = vmatpush3.msra.mxu0 %v372_v25  ;;  %1170 = vmatprep.subr.mxu1 %v738_v48 }
  0x3c   : > { %1099 = vmatprep.subr.mxu0 %v387_v27  ;;  %1171 = vmatpush3.msra.mxu1 %v738_v48  ;;  %v837_v48 = vld [vmem:[%s1762_s5 + $0x20] sm:$0xff] }
  0x3d   : > { %1100 = vmatpush3.msra.mxu0 %v371_v28  ;;  %1172 = vmatprep.subr.mxu1 %v737_v49 }
  0x3e   : > { %1101 = vmatprep.subr.mxu0 %v386_v29  ;;  %1173 = vmatpush3.msra.mxu1 %v737_v49  ;;  %v836_v49 = vld [vmem:[%s1762_s5 + $0x18] sm:$0xff] }
  0x3f   : > { %1102 = vmatpush3.msra.mxu0 %v370_v30  ;;  %1174 = vmatprep.subr.mxu1 %v736_v50 }
  0x40   : > { %1103 = vmatprep.subr.mxu0 %v385_v31  ;;  %1175 = vmatpush3.msra.mxu1 %v736_v50  ;;  %v835_v50 = vld [vmem:[%s1762_s5 + $0x10] sm:$0xff] }
  0x41   : > { %1104 = vmatpush3.msra.mxu0 %v369_v32  ;;  %1176 = vmatprep.subr.mxu1 %v735_v51 }
  0x42   : > { %1105 = vmatprep.subr.mxu0 %v384_v33  ;;  %1177 = vmatpush3.msra.mxu1 %v735_v51  ;;  %v834_v51 = vld [vmem:[%s1762_s5 + $0x8] sm:$0xff] }
  0x43   : > { %1106 = vmatpush3.msra.mxu0 %v368_v34  ;;  %1178 = vmatprep.subr.mxu1 %v734_v52 }
  0x44   : > { %1107 = vmatprep.subr.mxu0 %v383_v35  ;;  %1179 = vmatpush3.msra.mxu1 %v734_v52  ;;  %v833_v52 = vld [vmem:[%s1762_s5] sm:$0xff] }
  0x45   : > { %1108 = vmatpush3.msra.mxu0 %v367_v36  ;;  %1180 = vmatprep.subr.mxu1 %v733_v53 }
  0x46   : > { %1109 = vmatprep.subr.mxu0 %v382_v37  ;;  %1181 = vmatpush3.msra.mxu1 %v733_v53  ;;  %v848_v37 = vld [vmem:[%s1762_s5 + $0x78] sm:$0xff]  ;;  %v1003_v53 = vld [vmem:[%s1761_s4] ss:$0 sm:$0xff] }
  0x47   : > { %1110 = vmatpush3.msra.mxu0 %v366_v38  ;;  %1182 = vmatprep.subr.mxu1 %v732_v54  ;;  %v847_v38 = vld [vmem:[%s1762_s5 + $0x70] sm:$0xff] }
  0x48   : > { %1111 = vmatprep.subr.mxu0 %v381_v39  ;;  %1183 = vmatpush3.msra.mxu1 %v732_v54  ;;  %v846_v39 = vld [vmem:[%s1762_s5 + $0x68] sm:$0xff] }
  0x49   : > { %1112 = vmatpush3.msra.mxu0 %v365_v40  ;;  %1184 = vmatprep.subr.mxu1 %v731_v55  ;;  %v845_v40 = vld [vmem:[%s1762_s5 + $0x60] sm:$0xff] }
  0x4a   : > { %1113 = vmatprep.subr.mxu0 %v380_v41  ;;  %1185 = vmatpush3.msra.mxu1 %v731_v55  ;;  %v844_v41 = vld [vmem:[%s1762_s5 + $0x58] sm:$0xff] }
  0x4b   : > { %1114 = vmatpush3.msra.mxu0 %v364_v42  ;;  %1186 = vmatprep.subr.mxu1 %v730_v56  ;;  %v843_v42 = vld [vmem:[%s1762_s5 + $0x50] sm:$0xff] }
  0x4c   : > { %1115 = vmatprep.subr.mxu0 %v379_v43  ;;  %1187 = vmatpush3.msra.mxu1 %v730_v56  ;;  %v842_v43 = vld [vmem:[%s1762_s5 + $0x48] sm:$0xff] }
  0x4d   : > { %1116 = vmatpush3.msra.mxu0 %v363_v44  ;;  %1188 = vmatprep.subr.mxu1 %v729_v57  ;;  %v841_v44 = vld [vmem:[%s1762_s5 + $0x40] sm:$0xff] }
  0x4e   : > { %626 = vmatmul.mubr.f32.vlgmr.msra.gmra.mxu0 %v289_v45  ;;  %1189 = vmatpush3.msra.mxu1 %v729_v57  ;;  %v840_v45 = vld [vmem:[%s1762_s5 + $0x38] sm:$0xff] }
  0x4f   : > { %630 = vmatprep.mubr.f32.mxu0 %v297_v46  ;;  %1190 = vmatprep.subr.mxu1 %v728_v58  ;;  %v839_v46 = vld [vmem:[%s1762_s5 + $0x30] sm:$0xff] }
  0x50   : > { %1191 = vmatpush3.msra.mxu1 %v728_v58  ;;  %1205 = vmatprep.subr.mxu0 %v848_v37 }
  0x51   : > { %1192 = vmatprep.subr.mxu1 %v727_v59  ;;  %1206 = vmatpush3.msra.mxu0 %v848_v37 }
  0x52   : > { %631 = vmatmul.mubr.f32.gmra.mxu0 %v296_v47  ;;  %1193 = vmatpush3.msra.mxu1 %v727_v59  ;;  %v838_v47 = vld [vmem:[%s1762_s5 + $0x28] sm:$0xff] }
  0x53   : > { %1194 = vmatprep.subr.mxu1 %v726_v60  ;;  %1207 = vmatprep.subr.mxu0 %v847_v38 }
  0x54   : > { %1195 = vmatpush3.msra.mxu1 %v726_v60  ;;  %1208 = vmatpush3.msra.mxu0 %v847_v38 }
  0x55   : > { %1196 = vmatprep.subr.mxu1 %v725_v61  ;;  %1209 = vmatprep.subr.mxu0 %v846_v39 }
  0x56   : > { %1197 = vmatpush3.msra.mxu1 %v725_v61  ;;  %1210 = vmatpush3.msra.mxu0 %v846_v39 }
  0x57   : > { %1198 = vmatprep.subr.mxu1 %v724_v62  ;;  %1211 = vmatprep.subr.mxu0 %v845_v40 }
  0x58   : > { %1199 = vmatpush3.msra.mxu1 %v724_v62  ;;  %1212 = vmatpush3.msra.mxu0 %v845_v40 }
  0x59   : > { %1200 = vmatprep.subr.mxu1 %v723_v63  ;;  %1213 = vmatprep.subr.mxu0 %v844_v41 }
  0x5a   : > { %1201 = vmatpush3.msra.mxu1 %v723_v63  ;;  %1214 = vmatpush3.msra.mxu0 %v844_v41 }
  0x5b   : > { %1215 = vmatprep.subr.mxu0 %v843_v42 }
  0x5c   : > { %1216 = vmatpush3.msra.mxu0 %v843_v42 }
  0x5d   : > { %1217 = vmatprep.subr.mxu0 %v842_v43 }
  0x5e   : > { %1218 = vmatpush3.msra.mxu0 %v842_v43 }
  0x5f   : > { %1219 = vmatprep.subr.mxu0 %v841_v44 }
  0x60   : > { %1220 = vmatpush3.msra.mxu0 %v841_v44 }
  0x61   : > { %1221 = vmatprep.subr.mxu0 %v840_v45 }
  0x62   : > { %1222 = vmatpush3.msra.mxu0 %v840_v45 }
  0x63   : > { %1223 = vmatprep.subr.mxu0 %v839_v46 }
  0x64   : > { %1224 = vmatpush3.msra.mxu0 %v839_v46 }
  0x65   : > { %1225 = vmatprep.subr.mxu0 %v838_v47 }
  0x66   : > { %1226 = vmatpush3.msra.mxu0 %v838_v47 }
  0x67   : > { %1227 = vmatprep.subr.mxu0 %v837_v48 }
  0x68   : > { %1228 = vmatpush3.msra.mxu0 %v837_v48 }
  0x69   : > { %1229 = vmatprep.subr.mxu0 %v836_v49 }
  0x6a   : > { %1230 = vmatpush3.msra.mxu0 %v836_v49 }
  0x6b   : > { %1231 = vmatprep.subr.mxu0 %v835_v50 }
  0x6c   : > { %1232 = vmatpush3.msra.mxu0 %v835_v50 }
  0x6d   : > { %1233 = vmatprep.subr.mxu0 %v834_v51 }
  0x6e   : > { %1234 = vmatpush3.msra.mxu0 %v834_v51 }
  0x6f   : > { %1235 = vmatprep.subr.mxu0 %v833_v52 }
  0x70   : > { %1236 = vmatpush3.msra.mxu0 %v833_v52 }
  0xec   : > { %v1041_v0 = vpop.f32.mrf.mxu0 }
  0xee   : > { %v1042_v2 = vpop.f32.mrf.mxu0 }
  0xef   : > { %v1079_v1 = vpop.f32.mrf.mxu1  ;;  %v1043_v6 = vadd.f32 %v1042_v2, %v1041_v0 }
  0xf1   : > { %v1080_v3 = vpop.f32.mrf.mxu1  ;;  %v478_v10 = vadd.f32 %v1043_v6, %v998_v7 }
  0xf2   : > { %v1044_v4 = vpop.f32.mrf.mxu0  ;;  %v1081_v11 = vadd.f32 %v1080_v3, %v1079_v1  ;;  %v1006_v3 = vld [vmem:[%s1763_s6] ss:$0 sm:$0xff] }
  0xf3   : > { %v1082_v5 = vpop.f32.mrf.mxu1 }
  0xf4   : > { %v1045_v8 = vpop.f32.mrf.mxu0  ;;  %v553_v16 = vadd.f32 %v1081_v11, %v478_v10 }
  0xf5   : > { %v1083_v9 = vpop.f32.mrf.mxu1  ;;  %v1046_v12 = vadd.f32 %v1045_v8, %v1044_v4 }
  0xf6   : > { %v1084_v18 = vadd.f32 %v1083_v9, %v1082_v5 }
  0xf7   : > { %v483_v17 = vadd.f32 %v1046_v12, %v998_v7 }
  0xf9   : > { %v558_v24 = vadd.f32 %v1084_v18, %v483_v17 }
  0xfa   : > { %v1169_v14 = vpop.f32.mrf.mxu1 }
  0xfc   : > { %v702_v21 = vpop.f32.mrf.mxu1 }
 0x10e   : > { %v1117_v13 = vpop.f32.mrf.mxu0 }
 0x110   : > { %v1118_v15 = vpop.f32.mrf.mxu0 }
 0x111   : > { %v1119_v19 = vadd.f32 %v1118_v15, %v1117_v13 }
 0x112   : > { %v1120_v20 = vpop.f32.mrf.mxu0 }
 0x113   : > { %v628_v22 = vadd.f32 %v1119_v19, %v553_v16 }
 0x114   : > { %v1121_v23 = vpop.f32.mrf.mxu0 }
 0x115   : > { %v1122_v25 = vadd.f32 %v1121_v23, %v1120_v20  ;;  %v703_v26 = vadd.f32 %v702_v21, %v628_v22 }
 0x117   : > { %v633_v27 = vadd.f32 %v1122_v25, %v558_v24  ;;  %v1001_v28 = vmul.f32 -1.442695, %v703_v26 }
 0x119   : > { %v708_v29 = vadd.f32 %v1169_v14, %v633_v27  ;;  %1249 = vpow2.f32 %v1001_v28 }
 0x11b   : > { %v1002_v30 = vmul.f32 -1.442695, %v708_v29 }
 0x11d   : > { %1251 = vpow2.f32 %v1002_v30 }
 0x126   : > { %v1250_v31 = vpop.eup %1249 }
 0x127   : > { %v717_v32 = vadd.f32 1.0, %v1250_v31 }
 0x129   : > { %1253 = vrcp.f32 %v717_v32 }
 0x12a   : > { %v1252_v33 = vpop.eup %1251 }
 0x12b   : > { %v718_v34 = vadd.f32 1.0, %v1252_v33 }
 0x12d   : > { %1255 = vrcp.f32 %v718_v34 }
 0x136   : > { %v1254_v35 = vpop.eup %1253 }
 0x137   : > { %1202 = vmatprep.mubr.f32.mxu1 %v1254_v35 }
 0x13a   : > { %v1256_v36 = vpop.eup %1255 }
 0x13b   : > { %1203 = vmatmul.mubr.f32.vlgmr.msra.gmra.mxu1 %v1256_v36 }
 0x1fb   : > { %v1204_v54 = vpop.f32.mrf.mxu1 }
 0x1fc   : > { %v818_v55 = vadd.f32 %v1204_v54, %v1003_v53 }
 0x1fd   : > { %v812_v56 = vpop.f32.mrf.mxu1 }
 0x1fe   : > { %v1005_v57 = vmul.f32 -1.442695, %v818_v55  ;;  %v813_v58 = vadd.f32 %v1003_v53, %v812_v56 }
 0x200   : > { %1257 = vpow2.f32 %v1005_v57  ;;  %v1004_v59 = vmul.f32 -1.442695, %v813_v58 }
 0x202   : > { %1259 = vpow2.f32 %v1004_v59 }
 0x20d   : > { %v1258_v60 = vpop.eup %1257 }
 0x20e   : > { %v828_v62 = vadd.f32 1.0, %v1258_v60 }
 0x20f   : > { %v1260_v61 = vpop.eup %1259 }
 0x210   : > { %v827_v63 = vadd.f32 1.0, %v1260_v61 }
 0x212   : > { %1261 = vrcp.f32 %v827_v63 }
 0x213   : > { %1263 = vrcp.f32 %v828_v62 }
 0x21f   : > { %v1262_v0 = vpop.eup %1261 }
 0x220   : > { %v1264_v1 = vpop.eup %1263  ;;  %1237 = vmatprep.mubr.f32.mxu0 %v1262_v0 }
 0x221   : > { %1238 = vmatmul.mubr.f32.vlgmr.msra.gmra.mxu0 %v1264_v1 }
 0x2e1   : > { %v1239_v2 = vpop.f32.mrf.mxu0 }
 0x2e2   : > { %v928_v6 = vadd.f32 %v1239_v2, %v1006_v3 }
 0x2e3   : > { %v922_v4 = vpop.f32.mrf.mxu0 }
 0x2e4   : > { %v923_v5 = vadd.f32 %v1006_v3, %v922_v4  ;;  %932 = vst [vmem:[%s283_s29 + $0x8] sm:$0xff] %v928_v6 }
 0x2e6   : > { %931 = vst [vmem:[%s283_s29] sm:$0xff] %v923_v5 }
 0x2e7 PF: > { %s17_s24 = sadd.s32 1, %s1271_s24  }
 0x2e8   : > { %p14_p4 = scmp.ge.s32.totalorder %s17_s24, 4  }
 0x2ea   :  { %16 = sbr.rel (!%p14_p4) target bundleno = 1 (0x1), region = 78 }

</bundles_post_ra>
